<compile_context>
chip_gen: v5e
topology: v5e:2x2
jax: 0.10.0
libtpu: 0.0.40
codegen_flags: <defaults>
</compile_context>

<pallas_src>
import jax
import jax.numpy as jnp
import numpy as np
from jax.experimental import pallas as pl
from jax.experimental.pallas import tpu as pltpu

P = 16  # padded feature dim for the packed weight / bias buffers


def mlp_kernel(x_ref, w_ref, b_ref, o_ref):
    # x_ref: (2, tile_n)  -- features on sublanes, batch on lanes
    # w_ref: (5, P, P)    -- zero-padded (out, in) weights; layer 5 stored transposed
    # b_ref: (5, P, 1)    -- zero-padded bias column vectors
    # o_ref: (1, tile_n)  -- lane-dense output row

    x0 = x_ref[0:1, :]                                   # (1, tile_n)
    x1 = x_ref[1:2, :]                                   # (1, tile_n)

    # Layer 1: Linear(2, 10) + ReLU on the VPU.  A K=2 matmul would still cost
    # a full serial MXU pass; two broadcast FMAs use VALU slack instead.
    w1 = w_ref[0]                                        # (P, P)
    h = w1[:, 0:1] * x0 + w1[:, 1:2] * x1 + b_ref[0]     # (P, tile_n)
    h = jnp.maximum(h, 0.0)                              # padded rows stay exactly 0

    # Layers 2..4: Linear(10,10), Linear(10,10), Linear(10,5), each + ReLU (MXU).
    # Note: default f32 dot precision verified against the 1e-5 tolerance on TPU;
    # bump to lax.Precision.HIGHEST if a target generation needs it.
    for l in range(1, 4):
        h = jnp.dot(w_ref[l], h, preferred_element_type=jnp.float32) + b_ref[l]
        h = jnp.maximum(h, 0.0)

    # Layer 5: Linear(5, 1).  VPU multiply + sublane (XLU) reduce instead of a
    # 4th serial MXU hop.  W5^T is stored as a zero-padded column.
    w5_col = w_ref[4][:, 0:1]                            # (P, 1)
    out = jnp.sum(w5_col * h, axis=0, keepdims=True)     # (1, tile_n)
    o_ref[...] = out + b_ref[4][0:1, :]


def pack_params(params):
    """Pack the 5 (W, b) pairs (PyTorch orientation: W (out,in), b (out,)) into
    zero-padded (5, P, P) / (5, P, 1) buffers.  Layer 5's weight is stored
    transposed (as a column) so the kernel can use a VPU reduce."""
    w_packed = np.zeros((5, P, P), np.float32)
    b_packed = np.zeros((5, P, 1), np.float32)
    for l, (W, b) in enumerate(params):
        W = np.asarray(W, np.float32)
        b = np.asarray(b, np.float32)
        out_f, in_f = W.shape
        if l < 4:
            w_packed[l, :out_f, :in_f] = W
        else:
            w_packed[l, :in_f, :out_f] = W.T   # (5, 1) column for the VPU reduce
        b_packed[l, :out_f, 0] = b
    return jnp.asarray(w_packed), jnp.asarray(b_packed)


def _choose_tile_n(n, *, max_tile=4096, lane_quantum=512, target_steps=4):
    """Lane-tile heuristic: multiples of 512 (full 256-lane MXU groups, unmasked
    stores), as large as max_tile, while keeping >= target_steps grid steps so
    v7x's two TensorCores both get balanced work."""
    if n <= lane_quantum:
        return lane_quantum
    t = max(n // target_steps, lane_quantum)
    t = (t // lane_quantum) * lane_quantum
    return int(min(t, max_tile))


def mlp_forward(x, w_packed, b_packed, *, tile_n=None, feature_major=False):
    """x: (N, 2) float32 (PyTorch orientation), or (2, N) if feature_major=True
    (skips the wrapper-side HBM transpose copy).  Returns (N, 1) float32."""
    if feature_major:
        x_t = x.astype(jnp.float32)            # already (2, N)
    else:
        x_t = x.T.astype(jnp.float32)          # (N, 2) -> (2, N)
    N = x_t.shape[1]

    if tile_n is None:
        tile_n = _choose_tile_n(N)
    assert tile_n % 128 == 0, "tile_n must be a multiple of the 128-wide lane dim"

    grid = (pl.cdiv(N, tile_n),)               # partial last block handled by Pallas

    # ~550 flops/sample (2*sum(out*in)), ~12 bytes/sample of HBM traffic.
    cost = pl.CostEstimate(flops=550 * N, transcendentals=0, bytes_accessed=12 * N)

    def build_call(weight_pipeline_mode):
        extra = {}
        if weight_pipeline_mode is not None:
            extra = dict(pipeline_mode=weight_pipeline_mode)
        return pl.pallas_call(
            mlp_kernel,
            out_shape=jax.ShapeDtypeStruct((1, N), jnp.float32),
            grid_spec=pltpu.PrefetchScalarGridSpec(
                num_scalar_prefetch=0,
                grid=grid,
                in_specs=[
                    pl.BlockSpec((2, tile_n), lambda i: (0, i)),            # x tile
                    pl.BlockSpec((5, P, P), lambda i: (0, 0, 0), **extra),  # packed W
                    pl.BlockSpec((5, P, 1), lambda i: (0, 0, 0), **extra),  # packed b
                ],
                out_specs=pl.BlockSpec((1, tile_n), lambda i: (0, i)),
            ),
            compiler_params=pltpu.CompilerParams(
                dimension_semantics=("parallel",),   # batch tiles shard across TCs
            ),
            cost_estimate=cost,
        )

    try:
        # Grid-invariant weights/biases: single-buffered (no second VMEM copy).
        out = build_call(pl.Buffered(1))(x_t, w_packed, b_packed)
    except Exception:
        # Fallback: default double-buffering (still only ~10 KB of VMEM).
        out = build_call(None)(x_t, w_packed, b_packed)

    return out[0, :N].reshape(N, 1)


def init_params(key):
    """Deterministic init mimicking PyTorch Linear default (uniform +/- 1/sqrt(fan_in)),
    stored in PyTorch orientation: W (out, in), b (out,)."""
    dims = [(2, 10), (10, 10), (10, 10), (10, 5), (5, 1)]
    params = []
    for fan_in, fan_out in dims:
        key, kw, kb = jax.random.split(key, 3)
        bound = 1.0 / np.sqrt(fan_in)
        W = jax.random.uniform(kw, (fan_out, fan_in), jnp.float32, -bound, bound)
        b = jax.random.uniform(kb, (fan_out,), jnp.float32, -bound, bound)
        params.append((W, b))
    return params


def mlp_reference(x, params):
    h = x
    for i, (W, b) in enumerate(params):
        h = h @ W.T + b
        if i < len(params) - 1:
            h = jnp.maximum(h, 0.0)
    return h


if __name__ == "__main__":
    key = jax.random.PRNGKey(0)
    key, kx = jax.random.split(key)

    N = 3000                                   # not a tile multiple: exercises the
    x = jax.random.normal(kx, (N, 2), jnp.float32)  # boundary (partial) block path

    params = init_params(key)
    w_packed, b_packed = pack_params(params)

    # Auto tile selection -> tile_n=512 here, 6 even grid steps (>=2 per TC on v7x).
    out = mlp_forward(x, w_packed, b_packed)
    out = jax.block_until_ready(out)

    ref = mlp_reference(x, params)
    np.testing.assert_allclose(np.asarray(out), np.asarray(ref), rtol=1e-5, atol=1e-5)

    assert out.shape == (N, 1)
    print("KERNEL_OK")
</pallas_src>

<mosaic_0001>
module attributes {stable_mosaic.version = 11 : i64} {
  func.func @mlp_kernel(%arg0: i32, %arg1: memref<2x512xf32, #tpu.memory_space<vmem>>, %arg2: memref<5x16x16xf32, #tpu.memory_space<vmem>>, %arg3: memref<5x16x1xf32, #tpu.memory_space<vmem>>, %arg4: memref<1x512xf32, #tpu.memory_space<vmem>>) attributes {dimension_semantics = [#tpu.dimension_semantics<parallel>], iteration_bounds = array<i64: 6>, scalar_prefetch = 0 : i64, scratch_operands = 0 : i64, tpu.core_type = #tpu.core_type<tc>, window_params = [{transform_indices = @transform_0, window_bounds = array<i64: 2, 512>}, {pipeline_mode = #tpu.pipeline_mode<synchronous>, transform_indices = @transform_1, window_bounds = array<i64: 5, 16, 16>}, {pipeline_mode = #tpu.pipeline_mode<synchronous>, transform_indices = @transform_2, window_bounds = array<i64: 5, 16, 1>}, {transform_indices = @transform_3, window_bounds = array<i64: 1, 512>}]} {
    %c0 = arith.constant 0 : index
    %c0_0 = arith.constant 0 : index
    %0 = vector.load %arg1[%c0, %c0_0] : memref<2x512xf32, #tpu.memory_space<vmem>>, vector<1x512xf32>
    %c1 = arith.constant 1 : index
    %c0_1 = arith.constant 0 : index
    %1 = vector.load %arg1[%c1, %c0_1] : memref<2x512xf32, #tpu.memory_space<vmem>>, vector<1x512xf32>
    %c0_2 = arith.constant 0 : index
    %c0_3 = arith.constant 0 : index
    %c0_4 = arith.constant 0 : index
    %2 = vector.load %arg2[%c0_2, %c0_3, %c0_4] : memref<5x16x16xf32, #tpu.memory_space<vmem>>, vector<1x16x16xf32>
    %3 = vector.shape_cast %2 : vector<1x16x16xf32> to vector<16x16xf32>
    %4 = vector.extract_strided_slice %3 {offsets = [0, 0], sizes = [16, 1], strides = [1, 1]} : vector<16x16xf32> to vector<16x1xf32>
    %5 = vector.broadcast %4 : vector<16x1xf32> to vector<16x512xf32>
    %6 = vector.broadcast %0 : vector<1x512xf32> to vector<16x512xf32>
    %7 = arith.mulf %5, %6 : vector<16x512xf32>
    %8 = vector.extract_strided_slice %3 {offsets = [0, 1], sizes = [16, 1], strides = [1, 1]} : vector<16x16xf32> to vector<16x1xf32>
    %9 = vector.broadcast %8 : vector<16x1xf32> to vector<16x512xf32>
    %10 = vector.broadcast %1 : vector<1x512xf32> to vector<16x512xf32>
    %11 = arith.mulf %9, %10 : vector<16x512xf32>
    %12 = arith.addf %7, %11 : vector<16x512xf32>
    %c0_5 = arith.constant 0 : index
    %c0_6 = arith.constant 0 : index
    %c0_7 = arith.constant 0 : index
    %13 = vector.load %arg3[%c0_5, %c0_6, %c0_7] : memref<5x16x1xf32, #tpu.memory_space<vmem>>, vector<1x16x1xf32>
    %14 = vector.shape_cast %13 : vector<1x16x1xf32> to vector<16x1xf32>
    %15 = vector.broadcast %14 : vector<16x1xf32> to vector<16x512xf32>
    %16 = arith.addf %12, %15 : vector<16x512xf32>
    %cst = arith.constant 0.000000e+00 : f32
    %17 = vector.broadcast %cst : f32 to vector<16x512xf32>
    %18 = arith.maximumf %16, %17 : vector<16x512xf32>
    %c1_8 = arith.constant 1 : index
    %c0_9 = arith.constant 0 : index
    %c0_10 = arith.constant 0 : index
    %19 = vector.load %arg2[%c1_8, %c0_9, %c0_10] : memref<5x16x16xf32, #tpu.memory_space<vmem>>, vector<1x16x16xf32>
    %20 = vector.shape_cast %19 : vector<1x16x16xf32> to vector<16x16xf32>
    %cst_11 = arith.constant dense<0.000000e+00> : vector<16x512xf32>
    %21 = tpu.matmul %20, %18, %cst_11 {dimension_numbers = #tpu.dot_dimension_numbers<[1], [0], [0], [1], [0, 0, 1, 1], [], []>} : vector<16x16xf32>, vector<16x512xf32>, vector<16x512xf32> -> vector<16x512xf32>
    %c1_12 = arith.constant 1 : index
    %c0_13 = arith.constant 0 : index
    %c0_14 = arith.constant 0 : index
    %22 = vector.load %arg3[%c1_12, %c0_13, %c0_14] : memref<5x16x1xf32, #tpu.memory_space<vmem>>, vector<1x16x1xf32>
    %23 = vector.shape_cast %22 : vector<1x16x1xf32> to vector<16x1xf32>
    %24 = vector.broadcast %23 : vector<16x1xf32> to vector<16x512xf32>
    %25 = arith.addf %21, %24 : vector<16x512xf32>
    %cst_15 = arith.constant 0.000000e+00 : f32
    %26 = vector.broadcast %cst_15 : f32 to vector<16x512xf32>
    %27 = arith.maximumf %25, %26 : vector<16x512xf32>
    %c2 = arith.constant 2 : index
    %c0_16 = arith.constant 0 : index
    %c0_17 = arith.constant 0 : index
    %28 = vector.load %arg2[%c2, %c0_16, %c0_17] : memref<5x16x16xf32, #tpu.memory_space<vmem>>, vector<1x16x16xf32>
    %29 = vector.shape_cast %28 : vector<1x16x16xf32> to vector<16x16xf32>
    %cst_18 = arith.constant dense<0.000000e+00> : vector<16x512xf32>
    %30 = tpu.matmul %29, %27, %cst_18 {dimension_numbers = #tpu.dot_dimension_numbers<[1], [0], [0], [1], [0, 0, 1, 1], [], []>} : vector<16x16xf32>, vector<16x512xf32>, vector<16x512xf32> -> vector<16x512xf32>
    %c2_19 = arith.constant 2 : index
    %c0_20 = arith.constant 0 : index
    %c0_21 = arith.constant 0 : index
    %31 = vector.load %arg3[%c2_19, %c0_20, %c0_21] : memref<5x16x1xf32, #tpu.memory_space<vmem>>, vector<1x16x1xf32>
    %32 = vector.shape_cast %31 : vector<1x16x1xf32> to vector<16x1xf32>
    %33 = vector.broadcast %32 : vector<16x1xf32> to vector<16x512xf32>
    %34 = arith.addf %30, %33 : vector<16x512xf32>
    %cst_22 = arith.constant 0.000000e+00 : f32
    %35 = vector.broadcast %cst_22 : f32 to vector<16x512xf32>
    %36 = arith.maximumf %34, %35 : vector<16x512xf32>
    %c3 = arith.constant 3 : index
    %c0_23 = arith.constant 0 : index
    %c0_24 = arith.constant 0 : index
    %37 = vector.load %arg2[%c3, %c0_23, %c0_24] : memref<5x16x16xf32, #tpu.memory_space<vmem>>, vector<1x16x16xf32>
    %38 = vector.shape_cast %37 : vector<1x16x16xf32> to vector<16x16xf32>
    %cst_25 = arith.constant dense<0.000000e+00> : vector<16x512xf32>
    %39 = tpu.matmul %38, %36, %cst_25 {dimension_numbers = #tpu.dot_dimension_numbers<[1], [0], [0], [1], [0, 0, 1, 1], [], []>} : vector<16x16xf32>, vector<16x512xf32>, vector<16x512xf32> -> vector<16x512xf32>
    %c3_26 = arith.constant 3 : index
    %c0_27 = arith.constant 0 : index
    %c0_28 = arith.constant 0 : index
    %40 = vector.load %arg3[%c3_26, %c0_27, %c0_28] : memref<5x16x1xf32, #tpu.memory_space<vmem>>, vector<1x16x1xf32>
    %41 = vector.shape_cast %40 : vector<1x16x1xf32> to vector<16x1xf32>
    %42 = vector.broadcast %41 : vector<16x1xf32> to vector<16x512xf32>
    %43 = arith.addf %39, %42 : vector<16x512xf32>
    %cst_29 = arith.constant 0.000000e+00 : f32
    %44 = vector.broadcast %cst_29 : f32 to vector<16x512xf32>
    %45 = arith.maximumf %43, %44 : vector<16x512xf32>
    %c4 = arith.constant 4 : index
    %c0_30 = arith.constant 0 : index
    %c0_31 = arith.constant 0 : index
    %46 = vector.load %arg2[%c4, %c0_30, %c0_31] : memref<5x16x16xf32, #tpu.memory_space<vmem>>, vector<1x16x16xf32>
    %47 = vector.shape_cast %46 : vector<1x16x16xf32> to vector<16x16xf32>
    %48 = vector.extract_strided_slice %47 {offsets = [0, 0], sizes = [16, 1], strides = [1, 1]} : vector<16x16xf32> to vector<16x1xf32>
    %49 = vector.broadcast %48 : vector<16x1xf32> to vector<16x512xf32>
    %50 = arith.mulf %49, %45 : vector<16x512xf32>
    %cst_32 = arith.constant dense<0.000000e+00> : vector<512xf32>
    %51 = vector.multi_reduction <add>, %50, %cst_32 [0] : vector<16x512xf32> to vector<512xf32>
    %52 = vector.shape_cast %51 : vector<512xf32> to vector<1x512xf32>
    %c4_33 = arith.constant 4 : index
    %c0_34 = arith.constant 0 : index
    %c0_35 = arith.constant 0 : index
    %53 = vector.load %arg3[%c4_33, %c0_34, %c0_35] : memref<5x16x1xf32, #tpu.memory_space<vmem>>, vector<1x16x1xf32>
    %54 = vector.shape_cast %53 : vector<1x16x1xf32> to vector<16x1xf32>
    %55 = vector.extract_strided_slice %54 {offsets = [0, 0], sizes = [1, 1], strides = [1, 1]} : vector<16x1xf32> to vector<1x1xf32>
    %56 = vector.broadcast %55 : vector<1x1xf32> to vector<1x512xf32>
    %57 = arith.addf %52, %56 : vector<1x512xf32>
    %c0_36 = arith.constant 0 : index
    %c0_37 = arith.constant 0 : index
    %58 = vector.load %arg4[%c0_36, %c0_37] : memref<1x512xf32, #tpu.memory_space<vmem>>, vector<1x512xf32>
    tpu.vector_store %arg4[%c0_36, %c0_37], %57 {strides = array<i32>} : memref<1x512xf32, #tpu.memory_space<vmem>>, vector<1x512xf32>,
    return
  }
  func.func @transform_0(%arg0: i32) -> (i32, i32) {
    %c0_i32 = arith.constant 0 : i32
    %c0_i32_0 = arith.constant 0 : i32
    return %c0_i32, %arg0 : i32, i32
  }
  func.func @transform_1(%arg0: i32) -> (i32, i32, i32) {
    %c0_i32 = arith.constant 0 : i32
    %c0_i32_0 = arith.constant 0 : i32
    %c0_i32_1 = arith.constant 0 : i32
    %c0_i32_2 = arith.constant 0 : i32
    return %c0_i32, %c0_i32_0, %c0_i32_1 : i32, i32, i32
  }
  func.func @transform_2(%arg0: i32) -> (i32, i32, i32) {
    %c0_i32 = arith.constant 0 : i32
    %c0_i32_0 = arith.constant 0 : i32
    %c0_i32_1 = arith.constant 0 : i32
    %c0_i32_2 = arith.constant 0 : i32
    return %c0_i32, %c0_i32_0, %c0_i32_1 : i32, i32, i32
  }
  func.func @transform_3(%arg0: i32) -> (i32, i32) {
    %c0_i32 = arith.constant 0 : i32
    %c0_i32_0 = arith.constant 0 : i32
    return %c0_i32, %arg0 : i32, i32
  }
}

module attributes {stable_mosaic.version = 11 : i64} {
  func.func @mlp_kernel(%arg0: i32, %arg1: memref<2x512xf32, #tpu.memory_space<vmem>>, %arg2: memref<5x16x16xf32, #tpu.memory_space<vmem>>, %arg3: memref<5x16x1xf32, #tpu.memory_space<vmem>>, %arg4: memref<1x512xf32, #tpu.memory_space<vmem>>) attributes {dimension_semantics = [#tpu.dimension_semantics<parallel>], iteration_bounds = array<i64: 6>, scalar_prefetch = 0 : i64, scratch_operands = 0 : i64, tpu.core_type = #tpu.core_type<tc>, window_params = [{transform_indices = @transform_0, window_bounds = array<i64: 2, 512>}, {pipeline_mode = #tpu.pipeline_mode<synchronous>, transform_indices = @transform_1, window_bounds = array<i64: 5, 16, 16>}, {pipeline_mode = #tpu.pipeline_mode<synchronous>, transform_indices = @transform_2, window_bounds = array<i64: 5, 16, 1>}, {transform_indices = @transform_3, window_bounds = array<i64: 1, 512>}]} {
    %c0 = arith.constant 0 : index
    %c0_0 = arith.constant 0 : index
    %0 = vector.load %arg1[%c0, %c0_0] : memref<2x512xf32, #tpu.memory_space<vmem>>, vector<1x512xf32>
    %c1 = arith.constant 1 : index
    %c0_1 = arith.constant 0 : index
    %1 = vector.load %arg1[%c1, %c0_1] : memref<2x512xf32, #tpu.memory_space<vmem>>, vector<1x512xf32>
    %c0_2 = arith.constant 0 : index
    %c0_3 = arith.constant 0 : index
    %c0_4 = arith.constant 0 : index
    %2 = vector.load %arg2[%c0_2, %c0_3, %c0_4] : memref<5x16x16xf32, #tpu.memory_space<vmem>>, vector<1x16x16xf32>
    %3 = vector.shape_cast %2 : vector<1x16x16xf32> to vector<16x16xf32>
    %4 = vector.extract_strided_slice %3 {offsets = [0, 0], sizes = [16, 1], strides = [1, 1]} : vector<16x16xf32> to vector<16x1xf32>
    %5 = vector.broadcast %4 : vector<16x1xf32> to vector<16x512xf32>
    %6 = vector.broadcast %0 : vector<1x512xf32> to vector<16x512xf32>
    %7 = arith.mulf %5, %6 : vector<16x512xf32>
    %8 = vector.extract_strided_slice %3 {offsets = [0, 1], sizes = [16, 1], strides = [1, 1]} : vector<16x16xf32> to vector<16x1xf32>
    %9 = vector.broadcast %8 : vector<16x1xf32> to vector<16x512xf32>
    %10 = vector.broadcast %1 : vector<1x512xf32> to vector<16x512xf32>
    %11 = arith.mulf %9, %10 : vector<16x512xf32>
    %12 = arith.addf %7, %11 : vector<16x512xf32>
    %c0_5 = arith.constant 0 : index
    %c0_6 = arith.constant 0 : index
    %c0_7 = arith.constant 0 : index
    %13 = vector.load %arg3[%c0_5, %c0_6, %c0_7] : memref<5x16x1xf32, #tpu.memory_space<vmem>>, vector<1x16x1xf32>
    %14 = vector.shape_cast %13 : vector<1x16x1xf32> to vector<16x1xf32>
    %15 = vector.broadcast %14 : vector<16x1xf32> to vector<16x512xf32>
    %16 = arith.addf %12, %15 : vector<16x512xf32>
    %cst = arith.constant 0.000000e+00 : f32
    %17 = vector.broadcast %cst : f32 to vector<16x512xf32>
    %18 = arith.maximumf %16, %17 : vector<16x512xf32>
    %c1_8 = arith.constant 1 : index
    %c0_9 = arith.constant 0 : index
    %c0_10 = arith.constant 0 : index
    %19 = vector.load %arg2[%c1_8, %c0_9, %c0_10] : memref<5x16x16xf32, #tpu.memory_space<vmem>>, vector<1x16x16xf32>
    %20 = vector.shape_cast %19 : vector<1x16x16xf32> to vector<16x16xf32>
    %cst_11 = arith.constant dense<0.000000e+00> : vector<16x512xf32>
    %21 = tpu.matmul %20, %18, %cst_11 {dimension_numbers = #tpu.dot_dimension_numbers<[1], [0], [0], [1], [0, 0, 1, 1], [], []>} : vector<16x16xf32>, vector<16x512xf32>, vector<16x512xf32> -> vector<16x512xf32>
    %c1_12 = arith.constant 1 : index
    %c0_13 = arith.constant 0 : index
    %c0_14 = arith.constant 0 : index
    %22 = vector.load %arg3[%c1_12, %c0_13, %c0_14] : memref<5x16x1xf32, #tpu.memory_space<vmem>>, vector<1x16x1xf32>
    %23 = vector.shape_cast %22 : vector<1x16x1xf32> to vector<16x1xf32>
    %24 = vector.broadcast %23 : vector<16x1xf32> to vector<16x512xf32>
    %25 = arith.addf %21, %24 : vector<16x512xf32>
    %cst_15 = arith.constant 0.000000e+00 : f32
    %26 = vector.broadcast %cst_15 : f32 to vector<16x512xf32>
    %27 = arith.maximumf %25, %26 : vector<16x512xf32>
    %c2 = arith.constant 2 : index
    %c0_16 = arith.constant 0 : index
    %c0_17 = arith.constant 0 : index
    %28 = vector.load %arg2[%c2, %c0_16, %c0_17] : memref<5x16x16xf32, #tpu.memory_space<vmem>>, vector<1x16x16xf32>
    %29 = vector.shape_cast %28 : vector<1x16x16xf32> to vector<16x16xf32>
    %cst_18 = arith.constant dense<0.000000e+00> : vector<16x512xf32>
    %30 = tpu.matmul %29, %27, %cst_18 {dimension_numbers = #tpu.dot_dimension_numbers<[1], [0], [0], [1], [0, 0, 1, 1], [], []>} : vector<16x16xf32>, vector<16x512xf32>, vector<16x512xf32> -> vector<16x512xf32>
    %c2_19 = arith.constant 2 : index
    %c0_20 = arith.constant 0 : index
    %c0_21 = arith.constant 0 : index
    %31 = vector.load %arg3[%c2_19, %c0_20, %c0_21] : memref<5x16x1xf32, #tpu.memory_space<vmem>>, vector<1x16x1xf32>
    %32 = vector.shape_cast %31 : vector<1x16x1xf32> to vector<16x1xf32>
    %33 = vector.broadcast %32 : vector<16x1xf32> to vector<16x512xf32>
    %34 = arith.addf %30, %33 : vector<16x512xf32>
    %cst_22 = arith.constant 0.000000e+00 : f32
    %35 = vector.broadcast %cst_22 : f32 to vector<16x512xf32>
    %36 = arith.maximumf %34, %35 : vector<16x512xf32>
    %c3 = arith.constant 3 : index
    %c0_23 = arith.constant 0 : index
    %c0_24 = arith.constant 0 : index
    %37 = vector.load %arg2[%c3, %c0_23, %c0_24] : memref<5x16x16xf32, #tpu.memory_space<vmem>>, vector<1x16x16xf32>
    %38 = vector.shape_cast %37 : vector<1x16x16xf32> to vector<16x16xf32>
    %cst_25 = arith.constant dense<0.000000e+00> : vector<16x512xf32>
    %39 = tpu.matmul %38, %36, %cst_25 {dimension_numbers = #tpu.dot_dimension_numbers<[1], [0], [0], [1], [0, 0, 1, 1], [], []>} : vector<16x16xf32>, vector<16x512xf32>, vector<16x512xf32> -> vector<16x512xf32>
    %c3_26 = arith.constant 3 : index
    %c0_27 = arith.constant 0 : index
    %c0_28 = arith.constant 0 : index
    %40 = vector.load %arg3[%c3_26, %c0_27, %c0_28] : memref<5x16x1xf32, #tpu.memory_space<vmem>>, vector<1x16x1xf32>
    %41 = vector.shape_cast %40 : vector<1x16x1xf32> to vector<16x1xf32>
    %42 = vector.broadcast %41 : vector<16x1xf32> to vector<16x512xf32>
    %43 = arith.addf %39, %42 : vector<16x512xf32>
    %cst_29 = arith.constant 0.000000e+00 : f32
    %44 = vector.broadcast %cst_29 : f32 to vector<16x512xf32>
    %45 = arith.maximumf %43, %44 : vector<16x512xf32>
    %c4 = arith.constant 4 : index
    %c0_30 = arith.constant 0 : index
    %c0_31 = arith.constant 0 : index
    %46 = vector.load %arg2[%c4, %c0_30, %c0_31] : memref<5x16x16xf32, #tpu.memory_space<vmem>>, vector<1x16x16xf32>
    %47 = vector.shape_cast %46 : vector<1x16x16xf32> to vector<16x16xf32>
    %48 = vector.extract_strided_slice %47 {offsets = [0, 0], sizes = [16, 1], strides = [1, 1]} : vector<16x16xf32> to vector<16x1xf32>
    %49 = vector.broadcast %48 : vector<16x1xf32> to vector<16x512xf32>
    %50 = arith.mulf %49, %45 : vector<16x512xf32>
    %cst_32 = arith.constant dense<0.000000e+00> : vector<512xf32>
    %51 = vector.multi_reduction <add>, %50, %cst_32 [0] : vector<16x512xf32> to vector<512xf32>
    %52 = vector.shape_cast %51 : vector<512xf32> to vector<1x512xf32>
    %c4_33 = arith.constant 4 : index
    %c0_34 = arith.constant 0 : index
    %c0_35 = arith.constant 0 : index
    %53 = vector.load %arg3[%c4_33, %c0_34, %c0_35] : memref<5x16x1xf32, #tpu.memory_space<vmem>>, vector<1x16x1xf32>
    %54 = vector.shape_cast %53 : vector<1x16x1xf32> to vector<16x1xf32>
    %55 = vector.extract_strided_slice %54 {offsets = [0, 0], sizes = [1, 1], strides = [1, 1]} : vector<16x1xf32> to vector<1x1xf32>
    %56 = vector.broadcast %55 : vector<1x1xf32> to vector<1x512xf32>
    %57 = arith.addf %52, %56 : vector<1x512xf32>
    %c0_36 = arith.constant 0 : index
    %c0_37 = arith.constant 0 : index
    %58 = vector.load %arg4[%c0_36, %c0_37] : memref<1x512xf32, #tpu.memory_space<vmem>>, vector<1x512xf32>
    tpu.vector_store %arg4[%c0_36, %c0_37], %57 {strides = array<i32>} : memref<1x512xf32, #tpu.memory_space<vmem>>, vector<1x512xf32>,
    return
  }
  func.func @transform_0(%arg0: i32) -> (i32, i32) {
    %c0_i32 = arith.constant 0 : i32
    %c0_i32_0 = arith.constant 0 : i32
    return %c0_i32, %arg0 : i32, i32
  }
  func.func @transform_1(%arg0: i32) -> (i32, i32, i32) {
    %c0_i32 = arith.constant 0 : i32
    %c0_i32_0 = arith.constant 0 : i32
    %c0_i32_1 = arith.constant 0 : i32
    %c0_i32_2 = arith.constant 0 : i32
    return %c0_i32, %c0_i32_0, %c0_i32_1 : i32, i32, i32
  }
  func.func @transform_2(%arg0: i32) -> (i32, i32, i32) {
    %c0_i32 = arith.constant 0 : i32
    %c0_i32_0 = arith.constant 0 : i32
    %c0_i32_1 = arith.constant 0 : i32
    %c0_i32_2 = arith.constant 0 : i32
    return %c0_i32, %c0_i32_0, %c0_i32_1 : i32, i32, i32
  }
  func.func @transform_3(%arg0: i32) -> (i32, i32) {
    %c0_i32 = arith.constant 0 : i32
    %c0_i32_0 = arith.constant 0 : i32
    return %c0_i32, %arg0 : i32, i32
  }
}

</mosaic_0001>

<bundles_post_ra>
// kernel: tpu_custom_call.1
= control target key start
LH: loop header
LB: loop body
LE: loop exit
PB: predicated region body
PF: predicated region fallthrough
CT: control target
= control target key end

     0   :  { %8 = vsyncpa [#allocation3], 0  ;;  %s1256_s0 = inlined_call_operand.hbm [shape: f32[2,3000], index: 0, kind: input, shape index: {}]   ;;  %s1257_s1 = inlined_call_operand.vmem [shape: f32[5,16,16], index: 1, kind: input, shape index: {}]   ;;  %s1258_s2 = inlined_call_operand.vmem [shape: f32[5,16,1], index: 2, kind: input, shape index: {}]   ;;  %s1259_s3 = inlined_call_operand.hbm [shape: f32[1,3000], index: 3, kind: output, shape index: {}]  }
   0x1   :  { %10 = vsyncpa [#allocation3 + $0x1], 0 }
   0x2   :  { %11 = vsyncpa [#allocation4], 0 }
   0x3   :  { %13 = vsyncpa [#allocation4 + $0x1], 0  ;;  %s1045_s12 = smov 0   ;;  %s1047_s13 = smov 0  }
   0x4   :  { %s1049_s14 = smov 0   ;;  %s1051_s15 = smov 0  }
   0x5 LB: > { %s1066_s16 = sadd.s32 4294967295, %s1021_s15   ;;  %s816_s17 = sadd.s32 4294967294, %s1021_s15   ;;  %s1021_s15 = sphi %s1051_s15, %s1268_s15   ;;  %s1017_s14 = sphi %s1049_s14, %s1267_s14   ;;  %s1013_s13 = sphi %s1047_s13, %s1266_s13   ;;  %s1009_s12 = sphi %s1045_s12, %s1265_s12  }
   0x6   : > { %s1070_s18 = sadd.s32 1, %s1021_s15   ;;  %s26_s19 = sadd.s32 1, %s1017_s14 }
   0x7   : > { %s23_s20 = ssub.s32 %s1021_s15, %s1070_s18  ;;  %p33_p0 = scmp.ne.s32.totalorder %s1017_s14, %s1013_s13 }
   0x8   : > { %p24_p1 = scmp.eq.s32.totalorder %s23_s20, 0  ;;  %p34_p2 = scmp.eq.s32.totalorder %s1021_s15, 0 }
   0x9   : > { %p39_p3 = scmp.ne.s32.totalorder %s1013_s13, %s1009_s12  ;;  %p40_p4 = scmp.eq.s32.totalorder %s1066_s16, 0 }
   0xa   : > { %s1082_s21 = scalar_select %p24_p1, %s1017_s14, %s26_s19  }
   0xb   : > { %p1084_p5 = por %p34_p2, %p33_p0  ;;  %p1088_p6 = por %p40_p4, %p39_p3 }
   0xc   : > { %p105_p7 = scmp.eq.s32.totalorder %s1066_s16, 5  ;;  %p111_p8 = scmp.eq.s32.totalorder %s816_s17, 5 }
   0xd   : > { %p882_p9 = scmp.lt.s32.totalorder %s1021_s15, 6  ;;  %s137_s26 = sand.u32 1, %s1017_s14  }
   0xe   : > { %p1094_p10 = por %p105_p7, %p33_p0  ;;  %p1098_p11 = por %p111_p8, %p39_p3 }
   0xf   : > { %s869_s27 = sshll.u32 %s1021_s15, 3  ;;  %s819_s28 = sshll.u32 %s137_s26, 3 }
  0x10   : > { %s146_s4 = scalar_lea.hbm %s1256_s0, %s869_s27  ;;  %s141_s6 = scalar_lea.vmem [#allocation2], %s819_s28 }
  0x11   : > { %s148_s5 = sshll.u32 %s146_s4, 4  ;;  %s150_s7 = sshll.u32 %s141_s6, 4  ;;  %s149_s5 = int_to_ptr.hbm [resolvable:$true] %s148_s5  ;;  %s151_s7 = int_to_ptr.vmem [resolvable:$true] %s150_s7 }
  0x12   : > { %p1109_p12 = pnand %p882_p9, %p1084_p5  ;;  %p822_p13 = scmp.ge.s32.totalorder %s1021_s15, 1 }
  0x13   : > { %p155_p0 = scmp.lt.s32.totalorder %s1021_s15, 7  ;;  %s138_s9 = scalar_lea.sflag [#allocation3], %s137_s26 }
  0x14   : > { %s925_s10 = sshra.s32 %s149_s5, 4  ;;  %p929_p2 = pneg %p1109_p12  ;;  %s926_s10 = int_to_ptr.hbm [resolvable:$true] %s925_s10 }
  0x15   : > { %s927_s11 = scalar_lea.hbm %s926_s10, 8  ;;  %s932_s20 = scalar_lea.hbm %s1256_s0, 48 }
  0x16   : > { %p928_p1 = scmp.ne.s32.totalorder %s926_s10, %s927_s11  ;;  %p933_p5 = scmp.lt.s32.totalorder %s926_s10, %s1256_s0 }
  0x17   : > { %p934_p7 = scmp.lt.s32.totalorder %s932_s20, %s927_s11 }
  0x18   : > { %p930_p3 = pnand %p929_p2, %p928_p1 }
  0x19   : > { %p935_p8 = por %p934_p7, %p933_p5 }
  0x1a   : > { %p931_p4 = pneg %p930_p3 }
  0x1c   : > { %p936_p9 = pnand %p935_p8, %p931_p4 }
  0x1e   : > { %939 = shalt.err (!%p936_p9)
}
  0x1f   : > { %877 = dma.hbm_to_vmem [thread:$0]  (!%p1109_p12), %s149_s5, 128, %s151_s7, %s138_s9  }
  0x20   : > { %p156_p1 = pnand %p822_p13, %p155_p0 }
  0x21   : > { %s1130_s26 = sand.u32 (!%p156_p1), 1, %s1013_s13  }
  0x22   : > { %159 = sbr.rel (%p156_p1) target bundleno = 643 (0x283), region = 32  ;;  %s823_s28 = sshll.u32 (!%p156_p1), %s1130_s26, 3 }
  0x23   : > { %s162_s29 = scalar_lea.sflag (!%p156_p1), [#allocation3], %s1130_s26  ;;  %s1134_s30 = scalar_lea.vmem (!%p156_p1), [#allocation2], %s823_s28 }
  0x27   : > { %1000 = dma.done.wait (%p1088_p6), %s162_s29, 128  }
  0x28   : > { %1002 = vsyncadd (%p1088_p6), %s162_s29, 4294967168  ;;  %v1023_v0 = vmov 0   ;;  %v257_v1 = vld [vmem:[%s1258_s2 + $0x8] sm:$0xff]  ;;  %v194_v3 = vld [vmem:[%s1257_s1] sm:$0xff]  ;;  %v1024_v5 = vmov 1   ;;  %vm300_vm0 = vcmask 130048  }
  0x29   : > { %922 = vset.pattern.permute.xlu2 %v1023_v0  ;;  %920 = vset.pattern.permute.xlu1 %v1023_v0  ;;  %v195_v2 = vld [vmem:[%s1257_s1 + $0x8] sm:$0xff]  ;;  %v256_v4 = vld [vmem:[%s1258_s2] sm:$0xff]  ;;  %v828_v6 = vld [vmem:[%s1258_s2 + $0x10] sm:$0xff]  ;;  %s824_s8 = sshll.u32 %s1130_s26, 2  ;;  %s866_s9 = sshll.u32 %s1066_s16, 2  ;;  %vm718_vm1 = vcmask 1040384  }
  0x2a   : > { %918 = vset.pattern.permute.xlu0 %v1023_v0  ;;  %265 = vperm.xlu2 %922, %v257_v1   ;;  %v852_v7 = vld [vmem:[%s1258_s2 + $0x30] sm:$0xff]  ;;  %v862_v8 = vld [vmem:[%s1257_s1 + $0x40] sm:$0xff]  ;;  %v829_v9 = vld [vmem:[%s1258_s2 + $0x18] sm:$0xff]  ;;  %s741_s11 = scalar_lea.hbm %s1259_s3, %s866_s9  ;;  %vm720_vm2 = vcmask 1042434   ;;  %s188_s17 = scalar_lea.vmem [#allocation5], %s824_s8  ;;  %vm722_vm3 = vcmask 1041408  }
  0x2b   : > { %203 = vperm.xlu0 %918, %v195_v2   ;;  %198 = vperm.xlu1 %920, %v194_v3   ;;  %v840_v10 = vld [vmem:[%s1258_s2 + $0x20] sm:$0xff]  ;;  %v853_v20 = vld [vmem:[%s1258_s2 + $0x38] sm:$0xff]  ;;  %s743_s19 = sshll.u32 %s188_s17, 4  ;;  %s745_s16 = sshll.u32 %s741_s11, 4  ;;  %s744_s19 = int_to_ptr.vmem [resolvable:$true] %s743_s19  ;;  %s746_s16 = int_to_ptr.hbm [resolvable:$true] %s745_s16 }
  0x2c   : > { %v191_v13 = vld [vmem:[%s1134_s30] ss:$2 sm:$0xf]  ;;  %v825_v14 = vld [vmem:[%s1134_s30 + $0x1] ss:$2 sm:$0xf] }
  0x2d   : > { %v207_v16 = vperm.slane %v191_v13, 0  ;;  %v208_v17 = vperm.slane %v191_v13, 1  ;;  %v209_v18 = vperm.slane %v191_v13, 2  ;;  %v210_v19 = vperm.slane %v191_v13, 3  ;;  %v864_v51 = vld [vmem:[%s1258_s2 + $0x40] sm:$0xff]  ;;  %s731_s20 = scalar_lea.sflag [#allocation4], %s1130_s26 }
  0x2e   : > { %v232_v21 = vperm.slane %v825_v14, 0  ;;  %v233_v22 = vperm.slane %v825_v14, 1  ;;  %v234_v23 = vperm.slane %v825_v14, 2  ;;  %v235_v24 = vperm.slane %v825_v14, 3  ;;  %s969_s22 = sshra.s32 %s746_s16, 4  ;;  %s975_s4 = scalar_lea.hbm %s1259_s3, 24  ;;  %s970_s22 = int_to_ptr.hbm [resolvable:$true] %s969_s22 }
  0x2f   : > { %s971_s27 = scalar_lea.hbm %s970_s22, 4  ;;  %p976_p0 = scmp.lt.s32.totalorder %s970_s22, %s1259_s3 }
  0x30   : > { %p972_p6 = scmp.ne.s32.totalorder %s970_s22, %s971_s27  ;;  %p977_p2 = scmp.lt.s32.totalorder %s975_s4, %s971_s27 }
  0x32   : > { %260 = vperm.xlu2 %922, %v256_v4   ;;  %p973_p12 = pnand %p972_p6, %p1094_p10  ;;  %p978_p3 = por %p977_p2, %p976_p0 }
  0x33   : > { %919 = vset.pattern.permute.xlu0 %v1024_v5  ;;  %921 = vset.pattern.permute.xlu1 %v1024_v5  ;;  %v826_v5 = vld [vmem:[%s1257_s1 + $0x10] sm:$0xff] }
  0x34   : > { %228 = vperm.xlu0 %919, %v195_v2   ;;  %224 = vperm.xlu1 %921, %v194_v3   ;;  %p974_p13 = pneg %p973_p12 }
  0x36   : > { %p979_p4 = pnand %p978_p3, %p974_p13 }
  0x3a   : > { %292 = vperm.xlu2 %922, %v828_v6   ;;  %v827_v6 = vld [vmem:[%s1257_s1 + $0x18] sm:$0xff] }
  0x3c   : > { %924 = vset.pattern.permute.xlu0 %v1023_v0  ;;  %923 = vset.pattern.permute.xlu1 %v1023_v0 }
  0x3d   : > { %297 = vperm.xlu1 %923, %v829_v9  }
  0x42   : > { %537 = vperm.xlu2 %922, %v852_v7   ;;  %v841_v7 = vld [vmem:[%s1258_s2 + $0x28] sm:$0xff] }
  0x43   : > { %420 = vperm.xlu0 %924, %v841_v7  }
  0x45   : > { %415 = vperm.xlu1 %923, %v840_v10   ;;  %v863_v10 = vld [vmem:[%s1257_s1 + $0x48] sm:$0xff] }
  0x4a   : > { %656 = vperm.xlu2 %922, %v862_v8  }
  0x4b   : > { %661 = vperm.xlu0 %924, %v863_v10  }
  0x4d   : > { %542 = vperm.xlu1 %923, %v853_v20  }
  0x55   : > { %704 = vperm.xlu1 %923, %v864_v51  }
  0x84   : > { %v266_v15 = vpop.permute.xlu2 %265 }
  0x8c   : > { %v261_v52 = vpop.permute.xlu2 %260 }
  0x9d   : > { %v204_v11 = vpop.permute.xlu0 %203  ;;  %v199_v12 = vpop.permute.xlu1 %198 }
  0x9e   : > { %v219_v25 = vmul.f32 %v207_v16, %v204_v11  ;;  %v220_v26 = vmul.f32 %v208_v17, %v204_v11  ;;  %v221_v27 = vmul.f32 %v209_v18, %v204_v11  ;;  %v222_v28 = vmul.f32 %v210_v19, %v204_v11  ;;  %v293_v11 = vpop.permute.xlu2 %292 }
  0x9f   : > { %v215_v29 = vmul.f32 %v207_v16, %v199_v12  ;;  %v216_v30 = vmul.f32 %v208_v17, %v199_v12  ;;  %v217_v31 = vmul.f32 %v209_v18, %v199_v12  ;;  %v218_v32 = vmul.f32 %v210_v19, %v199_v12 }
  0xa6   : > { %v229_v33 = vpop.permute.xlu0 %228  ;;  %v225_v34 = vpop.permute.xlu1 %224 }
  0xa7   : > { %v244_v35 = vmul.f32 %v232_v21, %v229_v33  ;;  %v245_v36 = vmul.f32 %v233_v22, %v229_v33  ;;  %v246_v37 = vmul.f32 %v234_v23, %v229_v33  ;;  %v247_v38 = vmul.f32 %v235_v24, %v229_v33 }
  0xa8   : > { %v240_v39 = vmul.f32 %v232_v21, %v225_v34  ;;  %v241_v40 = vmul.f32 %v233_v22, %v225_v34  ;;  %v242_v41 = vmul.f32 %v234_v23, %v225_v34  ;;  %v243_v42 = vmul.f32 %v235_v24, %v225_v34 }
  0xa9   : > { %v252_v43 = vadd.f32 %v244_v35, %v219_v25  ;;  %v253_v44 = vadd.f32 %v245_v36, %v220_v26  ;;  %v254_v45 = vadd.f32 %v246_v37, %v221_v27  ;;  %v255_v46 = vadd.f32 %v247_v38, %v222_v28  ;;  %v838_v25 = vld [vmem:[%s1257_s1 + $0x20] sm:$0xff]  ;;  %v839_v36 = vld [vmem:[%s1257_s1 + $0x28] sm:$0xff] }
  0xaa   : > { %v248_v47 = vadd.f32 %v240_v39, %v215_v29  ;;  %v249_v48 = vadd.f32 %v241_v40, %v216_v30  ;;  %v250_v49 = vadd.f32 %v242_v41, %v217_v31  ;;  %v251_v50 = vadd.f32 %v243_v42, %v218_v32 }
  0xab   : > { %v272_v53 = vadd.f32 %v266_v15, %v252_v43  ;;  %v273_v54 = vadd.f32 %v266_v15, %v253_v44  ;;  %v274_v55 = vadd.f32 %v266_v15, %v254_v45  ;;  %v275_v56 = vadd.f32 %v266_v15, %v255_v46 }
  0xac   : > { %v268_v57 = vadd.f32 %v261_v52, %v248_v47  ;;  %v269_v58 = vadd.f32 %v261_v52, %v249_v48  ;;  %v270_v59 = vadd.f32 %v261_v52, %v250_v49  ;;  %v271_v60 = vadd.f32 %v261_v52, %v251_v50 }
  0xad   : > { %v280_v61 = vmax.f32 %v272_v53, 0.0  ;;  %v281_v62 = vmax.f32 %v273_v54, 0.0  ;;  %v282_v63 = vmax.f32 %v274_v55, 0.0  ;;  %v283_v0 = vmax.f32 %v275_v56, 0.0  ;;  %v850_v53 = vld [vmem:[%s1257_s1 + $0x30] sm:$0xff]  ;;  %v851_v56 = vld [vmem:[%s1257_s1 + $0x38] sm:$0xff] }
  0xae   : > { %v276_v1 = vmax.f32 %v268_v57, 0.0  ;;  %v277_v2 = vmax.f32 %v269_v58, 0.0  ;;  %v278_v3 = vmax.f32 %v270_v59, 0.0  ;;  %v279_v4 = vmax.f32 %v271_v60, 0.0 }
  0xaf   : > { %321 = vmatpush.msra.mxu0 %v280_v61  ;;  %344 = vmatpush.msra.mxu1 %v281_v62  ;;  %v298_v12 = vpop.permute.xlu1 %297 }
  0xb0   : > { %367 = vmatpush.msra.mxu2 %v282_v63  ;;  %390 = vmatpush.msra.mxu3 %v283_v0 }
  0xb1   : > { %322 = vmatpush.msra.mxu0 %v276_v1  ;;  %345 = vmatpush.msra.mxu1 %v277_v2 }
  0xb2   : > { %368 = vmatpush.msra.mxu2 %v278_v3  ;;  %391 = vmatpush.msra.mxu3 %v279_v4  ;;  %v538_v3 = vpop.permute.xlu2 %537 }
  0xb3   : > { %830 = vmatmul.msk.f32.vlgmr.msra.gmra.mxu0 %vm300_vm0, %v826_v5  ;;  %832 = vmatmul.msk.f32.vlgmr.msra.gmra.mxu1 %vm300_vm0, %v826_v5 }
  0xb4   : > { %834 = vmatmul.msk.f32.vlgmr.msra.gmra.mxu2 %vm300_vm0, %v826_v5  ;;  %836 = vmatmul.msk.f32.vlgmr.msra.gmra.mxu3 %vm300_vm0, %v826_v5 }
  0xb5   : > { %v421_v39 = vpop.permute.xlu0 %420 }
  0xb7   : > { %v416_v40 = vpop.permute.xlu1 %415 }
  0xbb   : > { %831 = vmatmul.msk.f32.gmra.mxu0 %vm300_vm0, %v827_v6  ;;  %833 = vmatmul.msk.f32.gmra.mxu1 %vm300_vm0, %v827_v6 }
  0xbc   : > { %835 = vmatmul.msk.f32.gmra.mxu2 %vm300_vm0, %v827_v6  ;;  %837 = vmatmul.msk.f32.gmra.mxu3 %vm300_vm0, %v827_v6 }
  0xbf   : > { %v543_v5 = vpop.permute.xlu1 %542 }
 0x130   : > { %v324_v8 = vpop.f32.mrf.mxu0  ;;  %v347_v9 = vpop.f32.mrf.mxu1 }
 0x131   : > { %v325_v17 = vadd.f32 %v324_v8, %v293_v11  ;;  %v348_v18 = vadd.f32 %v347_v9, %v293_v11 }
 0x133   : > { %v399_v23 = vmax.f32 %v325_v17, 0.0  ;;  %v400_v24 = vmax.f32 %v348_v18, 0.0 }
 0x137   : > { %v370_v13 = vpop.f32.mrf.mxu2  ;;  %v393_v14 = vpop.f32.mrf.mxu3 }
 0x138   : > { %v327_v15 = vpop.f32.mrf.mxu0  ;;  %v350_v16 = vpop.f32.mrf.mxu1  ;;  %v371_v26 = vadd.f32 %v370_v13, %v293_v11  ;;  %v394_v29 = vadd.f32 %v393_v14, %v293_v11 }
 0x139   : > { %v328_v19 = vadd.f32 %v327_v15, %v298_v12  ;;  %v351_v20 = vadd.f32 %v350_v16, %v298_v12  ;;  %v662_v13 = vpop.permute.xlu0 %661 }
 0x13a   : > { %v401_v34 = vmax.f32 %v371_v26, 0.0  ;;  %v402_v35 = vmax.f32 %v394_v29, 0.0 }
 0x13b   : > { %v403_v21 = vmax.f32 %v328_v19, 0.0  ;;  %v404_v22 = vmax.f32 %v351_v20, 0.0 }
 0x13d   : > { %443 = vmatpush.msrb.mxu0 %v403_v21  ;;  %466 = vmatpush.msrb.mxu1 %v404_v22 }
 0x13f   : > { %v373_v27 = vpop.f32.mrf.mxu2  ;;  %v396_v28 = vpop.f32.mrf.mxu3  ;;  %444 = vmatpush.msrb.mxu0 %v399_v23  ;;  %467 = vmatpush.msrb.mxu1 %v400_v24 }
 0x140   : > { %v374_v30 = vadd.f32 %v373_v27, %v298_v12  ;;  %v397_v31 = vadd.f32 %v396_v28, %v298_v12  ;;  %842 = vmatmul.msk.f32.vlgmr.msrb.gmra.mxu0 %vm300_vm0, %v838_v25  ;;  %844 = vmatmul.msk.f32.vlgmr.msrb.gmra.mxu1 %vm300_vm0, %v838_v25  ;;  %v657_v12 = vpop.permute.xlu2 %656 }
 0x142   : > { %v405_v32 = vmax.f32 %v374_v30, 0.0  ;;  %v406_v33 = vmax.f32 %v397_v31, 0.0 }
 0x144   : > { %489 = vmatpush.msrb.mxu2 %v405_v32  ;;  %512 = vmatpush.msrb.mxu3 %v406_v33 }
 0x146   : > { %490 = vmatpush.msrb.mxu2 %v401_v34  ;;  %513 = vmatpush.msrb.mxu3 %v402_v35 }
 0x147   : > { %846 = vmatmul.msk.f32.vlgmr.msrb.gmra.mxu2 %vm300_vm0, %v838_v25  ;;  %848 = vmatmul.msk.f32.vlgmr.msrb.gmra.mxu3 %vm300_vm0, %v838_v25 }
 0x148   : > { %843 = vmatmul.msk.f32.gmra.mxu0 %vm300_vm0, %v839_v36  ;;  %845 = vmatmul.msk.f32.gmra.mxu1 %vm300_vm0, %v839_v36 }
 0x14f   : > { %847 = vmatmul.msk.f32.gmra.mxu2 %vm300_vm0, %v839_v36  ;;  %849 = vmatmul.msk.f32.gmra.mxu3 %vm300_vm0, %v839_v36 }
 0x1bd   : > { %v446_v37 = vpop.f32.mrf.mxu0  ;;  %v469_v38 = vpop.f32.mrf.mxu1 }
 0x1be   : > { %v447_v43 = vadd.f32 %v446_v37, %v416_v40  ;;  %v470_v44 = vadd.f32 %v469_v38, %v416_v40 }
 0x1c0   : > { %v521_v49 = vmax.f32 %v447_v43, 0.0  ;;  %v522_v50 = vmax.f32 %v470_v44, 0.0 }
 0x1c5   : > { %v449_v41 = vpop.f32.mrf.mxu0  ;;  %v472_v42 = vpop.f32.mrf.mxu1 }
 0x1c6   : > { %v450_v45 = vadd.f32 %v449_v41, %v421_v39  ;;  %v473_v46 = vadd.f32 %v472_v42, %v421_v39 }
 0x1c8   : > { %v525_v47 = vmax.f32 %v450_v45, 0.0  ;;  %v526_v48 = vmax.f32 %v473_v46, 0.0 }
 0x1ca   : > { %v492_v51 = vpop.f32.mrf.mxu2  ;;  %v515_v52 = vpop.f32.mrf.mxu3  ;;  %565 = vmatpush.msra.mxu0 %v525_v47  ;;  %588 = vmatpush.msra.mxu1 %v526_v48 }
 0x1cb   : > { %v493_v57 = vadd.f32 %v492_v51, %v416_v40  ;;  %v516_v58 = vadd.f32 %v515_v52, %v416_v40 }
 0x1cc   : > { %566 = vmatpush.msra.mxu0 %v521_v49  ;;  %589 = vmatpush.msra.mxu1 %v522_v50 }
 0x1cd   : > { %854 = vmatmul.msk.f32.vlgmr.msra.gmra.mxu0 %vm300_vm0, %v850_v53  ;;  %856 = vmatmul.msk.f32.vlgmr.msra.gmra.mxu1 %vm300_vm0, %v850_v53  ;;  %v523_v63 = vmax.f32 %v493_v57, 0.0  ;;  %v524_v0 = vmax.f32 %v516_v58, 0.0 }
 0x1d2   : > { %v495_v54 = vpop.f32.mrf.mxu2  ;;  %v518_v55 = vpop.f32.mrf.mxu3 }
 0x1d3   : > { %v496_v59 = vadd.f32 %v495_v54, %v421_v39  ;;  %v519_v60 = vadd.f32 %v518_v55, %v421_v39 }
 0x1d5   : > { %v527_v61 = vmax.f32 %v496_v59, 0.0  ;;  %v528_v62 = vmax.f32 %v519_v60, 0.0  ;;  %855 = vmatmul.msk.f32.gmra.mxu0 %vm300_vm0, %v851_v56  ;;  %857 = vmatmul.msk.f32.gmra.mxu1 %vm300_vm0, %v851_v56  ;;  %v705_v60 = vpop.permute.xlu1 %704 }
 0x1d7   : > { %611 = vmatpush.msra.mxu2 %v527_v61  ;;  %634 = vmatpush.msra.mxu3 %v528_v62 }
 0x1d9   : > { %612 = vmatpush.msra.mxu2 %v523_v63  ;;  %635 = vmatpush.msra.mxu3 %v524_v0 }
 0x1da   : > { %858 = vmatmul.msk.f32.vlgmr.msra.gmra.mxu2 %vm300_vm0, %v850_v53  ;;  %860 = vmatmul.msk.f32.vlgmr.msra.gmra.mxu3 %vm300_vm0, %v850_v53 }
 0x1e2   : > { %859 = vmatmul.msk.f32.gmra.mxu2 %vm300_vm0, %v851_v56  ;;  %861 = vmatmul.msk.f32.gmra.mxu3 %vm300_vm0, %v851_v56 }
 0x24a   : > { %v568_v1 = vpop.f32.mrf.mxu0  ;;  %v591_v2 = vpop.f32.mrf.mxu1 }
 0x24b   : > { %v592_v4 = vadd.f32 %v591_v2, %v538_v3  ;;  %v569_v14 = vadd.f32 %v568_v1, %v538_v3 }
 0x24d   : > { %v644_v8 = vmax.f32 %v592_v4, 0.0  ;;  %v643_v19 = vmax.f32 %v569_v14, 0.0 }
 0x24f   : > { %v665_v15 = vmul.f32 %v657_v12, %v644_v8  ;;  %v664_v24 = vmul.f32 %v657_v12, %v643_v19 }
 0x252   : > { %v571_v6 = vpop.f32.mrf.mxu0  ;;  %v594_v7 = vpop.f32.mrf.mxu1 }
 0x253   : > { %v595_v9 = vadd.f32 %v594_v7, %v543_v5  ;;  %v572_v10 = vadd.f32 %v571_v6, %v543_v5 }
 0x255   : > { %v648_v11 = vmax.f32 %v595_v9, 0.0  ;;  %v647_v17 = vmax.f32 %v572_v10, 0.0 }
 0x257   : > { %v669_v16 = vmul.f32 %v662_v13, %v648_v11  ;;  %v668_v20 = vmul.f32 %v662_v13, %v647_v17 }
 0x259   : > { %v679_v18 = vadd.f32 %v669_v16, %v665_v15  ;;  %v672_v25 = vadd.f32 %v668_v20, %v664_v24 }
 0x25b   : > { %v680_v21 = vrot.slane %v679_v18, 4  ;;  %v673_v29 = vrot.slane %v672_v25, 4 }
 0x25d   : > { %v614_v22 = vpop.f32.mrf.mxu2  ;;  %v637_v23 = vpop.f32.mrf.mxu3  ;;  %v681_v26 = vadd.f32 %v680_v21, %v679_v18  ;;  %v674_v37 = vadd.f32 %v673_v29, %v672_v25 }
 0x25e   : > { %v615_v27 = vadd.f32 %v614_v22, %v538_v3  ;;  %v638_v28 = vadd.f32 %v637_v23, %v538_v3  ;;  %v725_v3 = vlaneseq }
 0x25f   : > { %v682_v30 = vrot.slane %v681_v26, 2  ;;  %v675_v45 = vrot.slane %v674_v37, 2 }
 0x260   : > { %v645_v33 = vmax.f32 %v615_v27, 0.0  ;;  %v646_v34 = vmax.f32 %v638_v28, 0.0  ;;  %vm727_vm4 = vcmp.lt.s32.totalorder %v725_v3, 512 }
 0x261   : > { %v683_v40 = vadd.f32 %v682_v30, %v681_v26  ;;  %v676_v51 = vadd.f32 %v675_v45, %v674_v37 }
 0x262   : > { %v666_v41 = vmul.f32 %v657_v12, %v645_v33  ;;  %v667_v42 = vmul.f32 %v657_v12, %v646_v34 }
 0x263   : > { %v684_v48 = vrot.slane %v683_v40, 1  ;;  %v677_v57 = vrot.slane %v676_v51, 1 }
 0x265   : > { %v617_v31 = vpop.f32.mrf.mxu2  ;;  %v640_v32 = vpop.f32.mrf.mxu3  ;;  %v685_v54 = vadd.f32 %v684_v48, %v683_v40  ;;  %v678_v0 = vadd.f32 %v677_v57, %v676_v51 }
 0x266   : > { %v618_v35 = vadd.f32 %v617_v31, %v543_v5  ;;  %v641_v36 = vadd.f32 %v640_v32, %v543_v5 }
 0x267   : > { %v708_v61 = vadd.f32 %v705_v60, %v685_v54  ;;  %v707_v7 = vadd.f32 %v705_v60, %v678_v0 }
 0x268   : > { %v649_v38 = vmax.f32 %v618_v35, 0.0  ;;  %v650_v39 = vmax.f32 %v641_v36, 0.0 }
 0x269   : > { %v715_v4 = vrot.slane %v708_v61, 7 }
 0x26a   : > { %v670_v43 = vmul.f32 %v662_v13, %v649_v38  ;;  %v671_v44 = vmul.f32 %v662_v13, %v650_v39 }
 0x26b   : > { %v719_v10 = vsel %vm718_vm1, %v707_v7, %v715_v4 }
 0x26c   : > { %v686_v46 = vadd.f32 %v670_v43, %v666_v41  ;;  %v693_v47 = vadd.f32 %v671_v44, %v667_v42 }
 0x26e   : > { %v687_v49 = vrot.slane %v686_v46, 4  ;;  %v694_v50 = vrot.slane %v693_v47, 4 }
 0x270   : > { %v688_v52 = vadd.f32 %v687_v49, %v686_v46  ;;  %v695_v53 = vadd.f32 %v694_v50, %v693_v47 }
 0x272   : > { %v689_v55 = vrot.slane %v688_v52, 2  ;;  %v696_v56 = vrot.slane %v695_v53, 2 }
 0x274   : > { %v690_v58 = vadd.f32 %v689_v55, %v688_v52  ;;  %v697_v59 = vadd.f32 %v696_v56, %v695_v53 }
 0x276   : > { %v691_v62 = vrot.slane %v690_v58, 1  ;;  %v698_v63 = vrot.slane %v697_v59, 1 }
 0x278   : > { %v692_v1 = vadd.f32 %v691_v62, %v690_v58  ;;  %v699_v2 = vadd.f32 %v698_v63, %v697_v59 }
 0x27a   : > { %v709_v5 = vadd.f32 %v705_v60, %v692_v1  ;;  %v710_v6 = vadd.f32 %v705_v60, %v699_v2 }
 0x27c   : > { %v716_v8 = vrot.slane %v709_v5, 6  ;;  %v717_v9 = vrot.slane %v710_v6, 5 }
 0x27e   : > { %v721_v11 = vsel %vm720_vm2, %v716_v8, %v717_v9 }
 0x27f   : > { %v723_v12 = vsel %vm722_vm3, %v719_v10, %v721_v11 }
 0x280   : > { %729 = vst.msk [vmem:[%s188_s17] sm:$0xf] %vm727_vm4, %v723_v12 }
 0x281   : > { %982 = shalt.err (!%p979_p4)
}
 0x282   : > { %872 = dma.vmem_to_hbm [thread:$0]  (%p1094_p10), %s744_s19, 64, %s746_s16, %s731_s20  }
 0x283 PF: > { %p883_p5 = scmp.ge.s32.totalorder %s1021_s15, 2  ;;  %s757_s26 = sand.u32 1, %s1009_s12  }
 0x284   : > { %s758_s7 = scalar_lea.sflag [#allocation4], %s757_s26 }
 0x285   : > { %p879_p7 = pnand %p883_p5, %p1098_p11 }
 0x287   : > { %p880_p8 = pneg %p879_p7 }
 0x289   : > { %1004 = dma.done.wait (%p880_p8), %s758_s7, 64  }
 0x28a   : > { %1006 = vsyncadd (%p880_p8), %s758_s7, 4294967232  ;;  %p16_p9 = scmp.ge.s32.totalorder %s1070_s18, 8   ;;  %s1265_s12 = smov %s1013_s13 }
 0x28b   : > { %s1266_s13 = smov %s1017_s14  ;;  %s1267_s14 = smov %s1082_s21 }
 0x28c   : > { %s1268_s15 = smov %s1070_s18  ;;  %18 = sbr.rel (!%p16_p9) target bundleno = 5 (0x5), region = 86 }
 0x291   :  { %764 = vsyncpa [#allocation3], 1 }
 0x292   :  { %766 = vsyncpa [#allocation3 + $0x1], 1 }
 0x293   :  { %767 = vsyncpa [#allocation4], 1 }
 0x294   :  { %769 = vsyncpa [#allocation4 + $0x1], 1 }

// kernel: tpu_custom_call.1
= control target key start
LH: loop header
LB: loop body
LE: loop exit
PB: predicated region body
PF: predicated region fallthrough
CT: control target
= control target key end

     0   :  { %8 = vsyncpa [#allocation3], 0  ;;  %s1256_s0 = inlined_call_operand.hbm [shape: f32[2,3000], index: 0, kind: input, shape index: {}]   ;;  %s1257_s1 = inlined_call_operand.vmem [shape: f32[5,16,16], index: 1, kind: input, shape index: {}]   ;;  %s1258_s2 = inlined_call_operand.vmem [shape: f32[5,16,1], index: 2, kind: input, shape index: {}]   ;;  %s1259_s3 = inlined_call_operand.hbm [shape: f32[1,3000], index: 3, kind: output, shape index: {}]  }
   0x1   :  { %10 = vsyncpa [#allocation3 + $0x1], 0 }
   0x2   :  { %11 = vsyncpa [#allocation4], 0 }
   0x3   :  { %13 = vsyncpa [#allocation4 + $0x1], 0  ;;  %s1045_s12 = smov 0   ;;  %s1047_s13 = smov 0  }
   0x4   :  { %s1049_s14 = smov 0   ;;  %s1051_s15 = smov 0  }
   0x5 LB: > { %s1066_s16 = sadd.s32 4294967295, %s1021_s15   ;;  %s816_s17 = sadd.s32 4294967294, %s1021_s15   ;;  %s1021_s15 = sphi %s1051_s15, %s1268_s15   ;;  %s1017_s14 = sphi %s1049_s14, %s1267_s14   ;;  %s1013_s13 = sphi %s1047_s13, %s1266_s13   ;;  %s1009_s12 = sphi %s1045_s12, %s1265_s12  }
   0x6   : > { %s1070_s18 = sadd.s32 1, %s1021_s15   ;;  %s26_s19 = sadd.s32 1, %s1017_s14 }
   0x7   : > { %s23_s20 = ssub.s32 %s1021_s15, %s1070_s18  ;;  %p33_p0 = scmp.ne.s32.totalorder %s1017_s14, %s1013_s13 }
   0x8   : > { %p24_p1 = scmp.eq.s32.totalorder %s23_s20, 0  ;;  %p34_p2 = scmp.eq.s32.totalorder %s1021_s15, 0 }
   0x9   : > { %p39_p3 = scmp.ne.s32.totalorder %s1013_s13, %s1009_s12  ;;  %p40_p4 = scmp.eq.s32.totalorder %s1066_s16, 0 }
   0xa   : > { %s1082_s21 = scalar_select %p24_p1, %s1017_s14, %s26_s19  }
   0xb   : > { %p1084_p5 = por %p34_p2, %p33_p0  ;;  %p1088_p6 = por %p40_p4, %p39_p3 }
   0xc   : > { %p105_p7 = scmp.eq.s32.totalorder %s1066_s16, 5  ;;  %p111_p8 = scmp.eq.s32.totalorder %s816_s17, 5 }
   0xd   : > { %p882_p9 = scmp.lt.s32.totalorder %s1021_s15, 6  ;;  %s137_s26 = sand.u32 1, %s1017_s14  }
   0xe   : > { %p1094_p10 = por %p105_p7, %p33_p0  ;;  %p1098_p11 = por %p111_p8, %p39_p3 }
   0xf   : > { %s869_s27 = sshll.u32 %s1021_s15, 3  ;;  %s819_s28 = sshll.u32 %s137_s26, 3 }
  0x10   : > { %s146_s4 = scalar_lea.hbm %s1256_s0, %s869_s27  ;;  %s141_s6 = scalar_lea.vmem [#allocation2], %s819_s28 }
  0x11   : > { %s148_s5 = sshll.u32 %s146_s4, 4  ;;  %s150_s7 = sshll.u32 %s141_s6, 4  ;;  %s149_s5 = int_to_ptr.hbm [resolvable:$true] %s148_s5  ;;  %s151_s7 = int_to_ptr.vmem [resolvable:$true] %s150_s7 }
  0x12   : > { %p1109_p12 = pnand %p882_p9, %p1084_p5  ;;  %p822_p13 = scmp.ge.s32.totalorder %s1021_s15, 1 }
  0x13   : > { %p155_p0 = scmp.lt.s32.totalorder %s1021_s15, 7  ;;  %s138_s9 = scalar_lea.sflag [#allocation3], %s137_s26 }
  0x14   : > { %s925_s10 = sshra.s32 %s149_s5, 4  ;;  %p929_p2 = pneg %p1109_p12  ;;  %s926_s10 = int_to_ptr.hbm [resolvable:$true] %s925_s10 }
  0x15   : > { %s927_s11 = scalar_lea.hbm %s926_s10, 8  ;;  %s932_s20 = scalar_lea.hbm %s1256_s0, 48 }
  0x16   : > { %p928_p1 = scmp.ne.s32.totalorder %s926_s10, %s927_s11  ;;  %p933_p5 = scmp.lt.s32.totalorder %s926_s10, %s1256_s0 }
  0x17   : > { %p934_p7 = scmp.lt.s32.totalorder %s932_s20, %s927_s11 }
  0x18   : > { %p930_p3 = pnand %p929_p2, %p928_p1 }
  0x19   : > { %p935_p8 = por %p934_p7, %p933_p5 }
  0x1a   : > { %p931_p4 = pneg %p930_p3 }
  0x1c   : > { %p936_p9 = pnand %p935_p8, %p931_p4 }
  0x1e   : > { %939 = shalt.err (!%p936_p9)
}
  0x1f   : > { %877 = dma.hbm_to_vmem [thread:$0]  (!%p1109_p12), %s149_s5, 128, %s151_s7, %s138_s9  }
  0x20   : > { %p156_p1 = pnand %p822_p13, %p155_p0 }
  0x21   : > { %s1130_s26 = sand.u32 (!%p156_p1), 1, %s1013_s13  }
  0x22   : > { %159 = sbr.rel (%p156_p1) target bundleno = 643 (0x283), region = 32  ;;  %s823_s28 = sshll.u32 (!%p156_p1), %s1130_s26, 3 }
  0x23   : > { %s162_s29 = scalar_lea.sflag (!%p156_p1), [#allocation3], %s1130_s26  ;;  %s1134_s30 = scalar_lea.vmem (!%p156_p1), [#allocation2], %s823_s28 }
  0x27   : > { %1000 = dma.done.wait (%p1088_p6), %s162_s29, 128  }
  0x28   : > { %1002 = vsyncadd (%p1088_p6), %s162_s29, 4294967168  ;;  %v1023_v0 = vmov 0   ;;  %v257_v1 = vld [vmem:[%s1258_s2 + $0x8] sm:$0xff]  ;;  %v194_v3 = vld [vmem:[%s1257_s1] sm:$0xff]  ;;  %v1024_v5 = vmov 1   ;;  %vm300_vm0 = vcmask 130048  }
  0x29   : > { %922 = vset.pattern.permute.xlu2 %v1023_v0  ;;  %920 = vset.pattern.permute.xlu1 %v1023_v0  ;;  %v195_v2 = vld [vmem:[%s1257_s1 + $0x8] sm:$0xff]  ;;  %v256_v4 = vld [vmem:[%s1258_s2] sm:$0xff]  ;;  %v828_v6 = vld [vmem:[%s1258_s2 + $0x10] sm:$0xff]  ;;  %s824_s8 = sshll.u32 %s1130_s26, 2  ;;  %s866_s9 = sshll.u32 %s1066_s16, 2  ;;  %vm718_vm1 = vcmask 1040384  }
  0x2a   : > { %918 = vset.pattern.permute.xlu0 %v1023_v0  ;;  %265 = vperm.xlu2 %922, %v257_v1   ;;  %v852_v7 = vld [vmem:[%s1258_s2 + $0x30] sm:$0xff]  ;;  %v862_v8 = vld [vmem:[%s1257_s1 + $0x40] sm:$0xff]  ;;  %v829_v9 = vld [vmem:[%s1258_s2 + $0x18] sm:$0xff]  ;;  %s741_s11 = scalar_lea.hbm %s1259_s3, %s866_s9  ;;  %vm720_vm2 = vcmask 1042434   ;;  %s188_s17 = scalar_lea.vmem [#allocation5], %s824_s8  ;;  %vm722_vm3 = vcmask 1041408  }
  0x2b   : > { %203 = vperm.xlu0 %918, %v195_v2   ;;  %198 = vperm.xlu1 %920, %v194_v3   ;;  %v840_v10 = vld [vmem:[%s1258_s2 + $0x20] sm:$0xff]  ;;  %v853_v20 = vld [vmem:[%s1258_s2 + $0x38] sm:$0xff]  ;;  %s743_s19 = sshll.u32 %s188_s17, 4  ;;  %s745_s16 = sshll.u32 %s741_s11, 4  ;;  %s744_s19 = int_to_ptr.vmem [resolvable:$true] %s743_s19  ;;  %s746_s16 = int_to_ptr.hbm [resolvable:$true] %s745_s16 }
  0x2c   : > { %v191_v13 = vld [vmem:[%s1134_s30] ss:$2 sm:$0xf]  ;;  %v825_v14 = vld [vmem:[%s1134_s30 + $0x1] ss:$2 sm:$0xf] }
  0x2d   : > { %v207_v16 = vperm.slane %v191_v13, 0  ;;  %v208_v17 = vperm.slane %v191_v13, 1  ;;  %v209_v18 = vperm.slane %v191_v13, 2  ;;  %v210_v19 = vperm.slane %v191_v13, 3  ;;  %v864_v51 = vld [vmem:[%s1258_s2 + $0x40] sm:$0xff]  ;;  %s731_s20 = scalar_lea.sflag [#allocation4], %s1130_s26 }
  0x2e   : > { %v232_v21 = vperm.slane %v825_v14, 0  ;;  %v233_v22 = vperm.slane %v825_v14, 1  ;;  %v234_v23 = vperm.slane %v825_v14, 2  ;;  %v235_v24 = vperm.slane %v825_v14, 3  ;;  %s969_s22 = sshra.s32 %s746_s16, 4  ;;  %s975_s4 = scalar_lea.hbm %s1259_s3, 24  ;;  %s970_s22 = int_to_ptr.hbm [resolvable:$true] %s969_s22 }
  0x2f   : > { %s971_s27 = scalar_lea.hbm %s970_s22, 4  ;;  %p976_p0 = scmp.lt.s32.totalorder %s970_s22, %s1259_s3 }
  0x30   : > { %p972_p6 = scmp.ne.s32.totalorder %s970_s22, %s971_s27  ;;  %p977_p2 = scmp.lt.s32.totalorder %s975_s4, %s971_s27 }
  0x32   : > { %260 = vperm.xlu2 %922, %v256_v4   ;;  %p973_p12 = pnand %p972_p6, %p1094_p10  ;;  %p978_p3 = por %p977_p2, %p976_p0 }
  0x33   : > { %919 = vset.pattern.permute.xlu0 %v1024_v5  ;;  %921 = vset.pattern.permute.xlu1 %v1024_v5  ;;  %v826_v5 = vld [vmem:[%s1257_s1 + $0x10] sm:$0xff] }
  0x34   : > { %228 = vperm.xlu0 %919, %v195_v2   ;;  %224 = vperm.xlu1 %921, %v194_v3   ;;  %p974_p13 = pneg %p973_p12 }
  0x36   : > { %p979_p4 = pnand %p978_p3, %p974_p13 }
  0x3a   : > { %292 = vperm.xlu2 %922, %v828_v6   ;;  %v827_v6 = vld [vmem:[%s1257_s1 + $0x18] sm:$0xff] }
  0x3c   : > { %924 = vset.pattern.permute.xlu0 %v1023_v0  ;;  %923 = vset.pattern.permute.xlu1 %v1023_v0 }
  0x3d   : > { %297 = vperm.xlu1 %923, %v829_v9  }
  0x42   : > { %537 = vperm.xlu2 %922, %v852_v7   ;;  %v841_v7 = vld [vmem:[%s1258_s2 + $0x28] sm:$0xff] }
  0x43   : > { %420 = vperm.xlu0 %924, %v841_v7  }
  0x45   : > { %415 = vperm.xlu1 %923, %v840_v10   ;;  %v863_v10 = vld [vmem:[%s1257_s1 + $0x48] sm:$0xff] }
  0x4a   : > { %656 = vperm.xlu2 %922, %v862_v8  }
  0x4b   : > { %661 = vperm.xlu0 %924, %v863_v10  }
  0x4d   : > { %542 = vperm.xlu1 %923, %v853_v20  }
  0x55   : > { %704 = vperm.xlu1 %923, %v864_v51  }
  0x84   : > { %v266_v15 = vpop.permute.xlu2 %265 }
  0x8c   : > { %v261_v52 = vpop.permute.xlu2 %260 }
  0x9d   : > { %v204_v11 = vpop.permute.xlu0 %203  ;;  %v199_v12 = vpop.permute.xlu1 %198 }
  0x9e   : > { %v219_v25 = vmul.f32 %v207_v16, %v204_v11  ;;  %v220_v26 = vmul.f32 %v208_v17, %v204_v11  ;;  %v221_v27 = vmul.f32 %v209_v18, %v204_v11  ;;  %v222_v28 = vmul.f32 %v210_v19, %v204_v11  ;;  %v293_v11 = vpop.permute.xlu2 %292 }
  0x9f   : > { %v215_v29 = vmul.f32 %v207_v16, %v199_v12  ;;  %v216_v30 = vmul.f32 %v208_v17, %v199_v12  ;;  %v217_v31 = vmul.f32 %v209_v18, %v199_v12  ;;  %v218_v32 = vmul.f32 %v210_v19, %v199_v12 }
  0xa6   : > { %v229_v33 = vpop.permute.xlu0 %228  ;;  %v225_v34 = vpop.permute.xlu1 %224 }
  0xa7   : > { %v244_v35 = vmul.f32 %v232_v21, %v229_v33  ;;  %v245_v36 = vmul.f32 %v233_v22, %v229_v33  ;;  %v246_v37 = vmul.f32 %v234_v23, %v229_v33  ;;  %v247_v38 = vmul.f32 %v235_v24, %v229_v33 }
  0xa8   : > { %v240_v39 = vmul.f32 %v232_v21, %v225_v34  ;;  %v241_v40 = vmul.f32 %v233_v22, %v225_v34  ;;  %v242_v41 = vmul.f32 %v234_v23, %v225_v34  ;;  %v243_v42 = vmul.f32 %v235_v24, %v225_v34 }
  0xa9   : > { %v252_v43 = vadd.f32 %v244_v35, %v219_v25  ;;  %v253_v44 = vadd.f32 %v245_v36, %v220_v26  ;;  %v254_v45 = vadd.f32 %v246_v37, %v221_v27  ;;  %v255_v46 = vadd.f32 %v247_v38, %v222_v28  ;;  %v838_v25 = vld [vmem:[%s1257_s1 + $0x20] sm:$0xff]  ;;  %v839_v36 = vld [vmem:[%s1257_s1 + $0x28] sm:$0xff] }
  0xaa   : > { %v248_v47 = vadd.f32 %v240_v39, %v215_v29  ;;  %v249_v48 = vadd.f32 %v241_v40, %v216_v30  ;;  %v250_v49 = vadd.f32 %v242_v41, %v217_v31  ;;  %v251_v50 = vadd.f32 %v243_v42, %v218_v32 }
  0xab   : > { %v272_v53 = vadd.f32 %v266_v15, %v252_v43  ;;  %v273_v54 = vadd.f32 %v266_v15, %v253_v44  ;;  %v274_v55 = vadd.f32 %v266_v15, %v254_v45  ;;  %v275_v56 = vadd.f32 %v266_v15, %v255_v46 }
  0xac   : > { %v268_v57 = vadd.f32 %v261_v52, %v248_v47  ;;  %v269_v58 = vadd.f32 %v261_v52, %v249_v48  ;;  %v270_v59 = vadd.f32 %v261_v52, %v250_v49  ;;  %v271_v60 = vadd.f32 %v261_v52, %v251_v50 }
  0xad   : > { %v280_v61 = vmax.f32 %v272_v53, 0.0  ;;  %v281_v62 = vmax.f32 %v273_v54, 0.0  ;;  %v282_v63 = vmax.f32 %v274_v55, 0.0  ;;  %v283_v0 = vmax.f32 %v275_v56, 0.0  ;;  %v850_v53 = vld [vmem:[%s1257_s1 + $0x30] sm:$0xff]  ;;  %v851_v56 = vld [vmem:[%s1257_s1 + $0x38] sm:$0xff] }
  0xae   : > { %v276_v1 = vmax.f32 %v268_v57, 0.0  ;;  %v277_v2 = vmax.f32 %v269_v58, 0.0  ;;  %v278_v3 = vmax.f32 %v270_v59, 0.0  ;;  %v279_v4 = vmax.f32 %v271_v60, 0.0 }
  0xaf   : > { %321 = vmatpush.msra.mxu0 %v280_v61  ;;  %344 = vmatpush.msra.mxu1 %v281_v62  ;;  %v298_v12 = vpop.permute.xlu1 %297 }
  0xb0   : > { %367 = vmatpush.msra.mxu2 %v282_v63  ;;  %390 = vmatpush.msra.mxu3 %v283_v0 }
  0xb1   : > { %322 = vmatpush.msra.mxu0 %v276_v1  ;;  %345 = vmatpush.msra.mxu1 %v277_v2 }
  0xb2   : > { %368 = vmatpush.msra.mxu2 %v278_v3  ;;  %391 = vmatpush.msra.mxu3 %v279_v4  ;;  %v538_v3 = vpop.permute.xlu2 %537 }
  0xb3   : > { %830 = vmatmul.msk.f32.vlgmr.msra.gmra.mxu0 %vm300_vm0, %v826_v5  ;;  %832 = vmatmul.msk.f32.vlgmr.msra.gmra.mxu1 %vm300_vm0, %v826_v5 }
  0xb4   : > { %834 = vmatmul.msk.f32.vlgmr.msra.gmra.mxu2 %vm300_vm0, %v826_v5  ;;  %836 = vmatmul.msk.f32.vlgmr.msra.gmra.mxu3 %vm300_vm0, %v826_v5 }
  0xb5   : > { %v421_v39 = vpop.permute.xlu0 %420 }
  0xb7   : > { %v416_v40 = vpop.permute.xlu1 %415 }
  0xbb   : > { %831 = vmatmul.msk.f32.gmra.mxu0 %vm300_vm0, %v827_v6  ;;  %833 = vmatmul.msk.f32.gmra.mxu1 %vm300_vm0, %v827_v6 }
  0xbc   : > { %835 = vmatmul.msk.f32.gmra.mxu2 %vm300_vm0, %v827_v6  ;;  %837 = vmatmul.msk.f32.gmra.mxu3 %vm300_vm0, %v827_v6 }
  0xbf   : > { %v543_v5 = vpop.permute.xlu1 %542 }
 0x130   : > { %v324_v8 = vpop.f32.mrf.mxu0  ;;  %v347_v9 = vpop.f32.mrf.mxu1 }
 0x131   : > { %v325_v17 = vadd.f32 %v324_v8, %v293_v11  ;;  %v348_v18 = vadd.f32 %v347_v9, %v293_v11 }
 0x133   : > { %v399_v23 = vmax.f32 %v325_v17, 0.0  ;;  %v400_v24 = vmax.f32 %v348_v18, 0.0 }
 0x137   : > { %v370_v13 = vpop.f32.mrf.mxu2  ;;  %v393_v14 = vpop.f32.mrf.mxu3 }
 0x138   : > { %v327_v15 = vpop.f32.mrf.mxu0  ;;  %v350_v16 = vpop.f32.mrf.mxu1  ;;  %v371_v26 = vadd.f32 %v370_v13, %v293_v11  ;;  %v394_v29 = vadd.f32 %v393_v14, %v293_v11 }
 0x139   : > { %v328_v19 = vadd.f32 %v327_v15, %v298_v12  ;;  %v351_v20 = vadd.f32 %v350_v16, %v298_v12  ;;  %v662_v13 = vpop.permute.xlu0 %661 }
 0x13a   : > { %v401_v34 = vmax.f32 %v371_v26, 0.0  ;;  %v402_v35 = vmax.f32 %v394_v29, 0.0 }
 0x13b   : > { %v403_v21 = vmax.f32 %v328_v19, 0.0  ;;  %v404_v22 = vmax.f32 %v351_v20, 0.0 }
 0x13d   : > { %443 = vmatpush.msrb.mxu0 %v403_v21  ;;  %466 = vmatpush.msrb.mxu1 %v404_v22 }
 0x13f   : > { %v373_v27 = vpop.f32.mrf.mxu2  ;;  %v396_v28 = vpop.f32.mrf.mxu3  ;;  %444 = vmatpush.msrb.mxu0 %v399_v23  ;;  %467 = vmatpush.msrb.mxu1 %v400_v24 }
 0x140   : > { %v374_v30 = vadd.f32 %v373_v27, %v298_v12  ;;  %v397_v31 = vadd.f32 %v396_v28, %v298_v12  ;;  %842 = vmatmul.msk.f32.vlgmr.msrb.gmra.mxu0 %vm300_vm0, %v838_v25  ;;  %844 = vmatmul.msk.f32.vlgmr.msrb.gmra.mxu1 %vm300_vm0, %v838_v25  ;;  %v657_v12 = vpop.permute.xlu2 %656 }
 0x142   : > { %v405_v32 = vmax.f32 %v374_v30, 0.0  ;;  %v406_v33 = vmax.f32 %v397_v31, 0.0 }
 0x144   : > { %489 = vmatpush.msrb.mxu2 %v405_v32  ;;  %512 = vmatpush.msrb.mxu3 %v406_v33 }
 0x146   : > { %490 = vmatpush.msrb.mxu2 %v401_v34  ;;  %513 = vmatpush.msrb.mxu3 %v402_v35 }
 0x147   : > { %846 = vmatmul.msk.f32.vlgmr.msrb.gmra.mxu2 %vm300_vm0, %v838_v25  ;;  %848 = vmatmul.msk.f32.vlgmr.msrb.gmra.mxu3 %vm300_vm0, %v838_v25 }
 0x148   : > { %843 = vmatmul.msk.f32.gmra.mxu0 %vm300_vm0, %v839_v36  ;;  %845 = vmatmul.msk.f32.gmra.mxu1 %vm300_vm0, %v839_v36 }
 0x14f   : > { %847 = vmatmul.msk.f32.gmra.mxu2 %vm300_vm0, %v839_v36  ;;  %849 = vmatmul.msk.f32.gmra.mxu3 %vm300_vm0, %v839_v36 }
 0x1bd   : > { %v446_v37 = vpop.f32.mrf.mxu0  ;;  %v469_v38 = vpop.f32.mrf.mxu1 }
 0x1be   : > { %v447_v43 = vadd.f32 %v446_v37, %v416_v40  ;;  %v470_v44 = vadd.f32 %v469_v38, %v416_v40 }
 0x1c0   : > { %v521_v49 = vmax.f32 %v447_v43, 0.0  ;;  %v522_v50 = vmax.f32 %v470_v44, 0.0 }
 0x1c5   : > { %v449_v41 = vpop.f32.mrf.mxu0  ;;  %v472_v42 = vpop.f32.mrf.mxu1 }
 0x1c6   : > { %v450_v45 = vadd.f32 %v449_v41, %v421_v39  ;;  %v473_v46 = vadd.f32 %v472_v42, %v421_v39 }
 0x1c8   : > { %v525_v47 = vmax.f32 %v450_v45, 0.0  ;;  %v526_v48 = vmax.f32 %v473_v46, 0.0 }
 0x1ca   : > { %v492_v51 = vpop.f32.mrf.mxu2  ;;  %v515_v52 = vpop.f32.mrf.mxu3  ;;  %565 = vmatpush.msra.mxu0 %v525_v47  ;;  %588 = vmatpush.msra.mxu1 %v526_v48 }
 0x1cb   : > { %v493_v57 = vadd.f32 %v492_v51, %v416_v40  ;;  %v516_v58 = vadd.f32 %v515_v52, %v416_v40 }
 0x1cc   : > { %566 = vmatpush.msra.mxu0 %v521_v49  ;;  %589 = vmatpush.msra.mxu1 %v522_v50 }
 0x1cd   : > { %854 = vmatmul.msk.f32.vlgmr.msra.gmra.mxu0 %vm300_vm0, %v850_v53  ;;  %856 = vmatmul.msk.f32.vlgmr.msra.gmra.mxu1 %vm300_vm0, %v850_v53  ;;  %v523_v63 = vmax.f32 %v493_v57, 0.0  ;;  %v524_v0 = vmax.f32 %v516_v58, 0.0 }
 0x1d2   : > { %v495_v54 = vpop.f32.mrf.mxu2  ;;  %v518_v55 = vpop.f32.mrf.mxu3 }
 0x1d3   : > { %v496_v59 = vadd.f32 %v495_v54, %v421_v39  ;;  %v519_v60 = vadd.f32 %v518_v55, %v421_v39 }
 0x1d5   : > { %v527_v61 = vmax.f32 %v496_v59, 0.0  ;;  %v528_v62 = vmax.f32 %v519_v60, 0.0  ;;  %855 = vmatmul.msk.f32.gmra.mxu0 %vm300_vm0, %v851_v56  ;;  %857 = vmatmul.msk.f32.gmra.mxu1 %vm300_vm0, %v851_v56  ;;  %v705_v60 = vpop.permute.xlu1 %704 }
 0x1d7   : > { %611 = vmatpush.msra.mxu2 %v527_v61  ;;  %634 = vmatpush.msra.mxu3 %v528_v62 }
 0x1d9   : > { %612 = vmatpush.msra.mxu2 %v523_v63  ;;  %635 = vmatpush.msra.mxu3 %v524_v0 }
 0x1da   : > { %858 = vmatmul.msk.f32.vlgmr.msra.gmra.mxu2 %vm300_vm0, %v850_v53  ;;  %860 = vmatmul.msk.f32.vlgmr.msra.gmra.mxu3 %vm300_vm0, %v850_v53 }
 0x1e2   : > { %859 = vmatmul.msk.f32.gmra.mxu2 %vm300_vm0, %v851_v56  ;;  %861 = vmatmul.msk.f32.gmra.mxu3 %vm300_vm0, %v851_v56 }
 0x24a   : > { %v568_v1 = vpop.f32.mrf.mxu0  ;;  %v591_v2 = vpop.f32.mrf.mxu1 }
 0x24b   : > { %v592_v4 = vadd.f32 %v591_v2, %v538_v3  ;;  %v569_v14 = vadd.f32 %v568_v1, %v538_v3 }
 0x24d   : > { %v644_v8 = vmax.f32 %v592_v4, 0.0  ;;  %v643_v19 = vmax.f32 %v569_v14, 0.0 }
 0x24f   : > { %v665_v15 = vmul.f32 %v657_v12, %v644_v8  ;;  %v664_v24 = vmul.f32 %v657_v12, %v643_v19 }
 0x252   : > { %v571_v6 = vpop.f32.mrf.mxu0  ;;  %v594_v7 = vpop.f32.mrf.mxu1 }
 0x253   : > { %v595_v9 = vadd.f32 %v594_v7, %v543_v5  ;;  %v572_v10 = vadd.f32 %v571_v6, %v543_v5 }
 0x255   : > { %v648_v11 = vmax.f32 %v595_v9, 0.0  ;;  %v647_v17 = vmax.f32 %v572_v10, 0.0 }
 0x257   : > { %v669_v16 = vmul.f32 %v662_v13, %v648_v11  ;;  %v668_v20 = vmul.f32 %v662_v13, %v647_v17 }
 0x259   : > { %v679_v18 = vadd.f32 %v669_v16, %v665_v15  ;;  %v672_v25 = vadd.f32 %v668_v20, %v664_v24 }
 0x25b   : > { %v680_v21 = vrot.slane %v679_v18, 4  ;;  %v673_v29 = vrot.slane %v672_v25, 4 }
 0x25d   : > { %v614_v22 = vpop.f32.mrf.mxu2  ;;  %v637_v23 = vpop.f32.mrf.mxu3  ;;  %v681_v26 = vadd.f32 %v680_v21, %v679_v18  ;;  %v674_v37 = vadd.f32 %v673_v29, %v672_v25 }
 0x25e   : > { %v615_v27 = vadd.f32 %v614_v22, %v538_v3  ;;  %v638_v28 = vadd.f32 %v637_v23, %v538_v3  ;;  %v725_v3 = vlaneseq }
 0x25f   : > { %v682_v30 = vrot.slane %v681_v26, 2  ;;  %v675_v45 = vrot.slane %v674_v37, 2 }
 0x260   : > { %v645_v33 = vmax.f32 %v615_v27, 0.0  ;;  %v646_v34 = vmax.f32 %v638_v28, 0.0  ;;  %vm727_vm4 = vcmp.lt.s32.totalorder %v725_v3, 512 }
 0x261   : > { %v683_v40 = vadd.f32 %v682_v30, %v681_v26  ;;  %v676_v51 = vadd.f32 %v675_v45, %v674_v37 }
 0x262   : > { %v666_v41 = vmul.f32 %v657_v12, %v645_v33  ;;  %v667_v42 = vmul.f32 %v657_v12, %v646_v34 }
 0x263   : > { %v684_v48 = vrot.slane %v683_v40, 1  ;;  %v677_v57 = vrot.slane %v676_v51, 1 }
 0x265   : > { %v617_v31 = vpop.f32.mrf.mxu2  ;;  %v640_v32 = vpop.f32.mrf.mxu3  ;;  %v685_v54 = vadd.f32 %v684_v48, %v683_v40  ;;  %v678_v0 = vadd.f32 %v677_v57, %v676_v51 }
 0x266   : > { %v618_v35 = vadd.f32 %v617_v31, %v543_v5  ;;  %v641_v36 = vadd.f32 %v640_v32, %v543_v5 }
 0x267   : > { %v708_v61 = vadd.f32 %v705_v60, %v685_v54  ;;  %v707_v7 = vadd.f32 %v705_v60, %v678_v0 }
 0x268   : > { %v649_v38 = vmax.f32 %v618_v35, 0.0  ;;  %v650_v39 = vmax.f32 %v641_v36, 0.0 }
 0x269   : > { %v715_v4 = vrot.slane %v708_v61, 7 }
 0x26a   : > { %v670_v43 = vmul.f32 %v662_v13, %v649_v38  ;;  %v671_v44 = vmul.f32 %v662_v13, %v650_v39 }
 0x26b   : > { %v719_v10 = vsel %vm718_vm1, %v707_v7, %v715_v4 }
 0x26c   : > { %v686_v46 = vadd.f32 %v670_v43, %v666_v41  ;;  %v693_v47 = vadd.f32 %v671_v44, %v667_v42 }
 0x26e   : > { %v687_v49 = vrot.slane %v686_v46, 4  ;;  %v694_v50 = vrot.slane %v693_v47, 4 }
 0x270   : > { %v688_v52 = vadd.f32 %v687_v49, %v686_v46  ;;  %v695_v53 = vadd.f32 %v694_v50, %v693_v47 }
 0x272   : > { %v689_v55 = vrot.slane %v688_v52, 2  ;;  %v696_v56 = vrot.slane %v695_v53, 2 }
 0x274   : > { %v690_v58 = vadd.f32 %v689_v55, %v688_v52  ;;  %v697_v59 = vadd.f32 %v696_v56, %v695_v53 }
 0x276   : > { %v691_v62 = vrot.slane %v690_v58, 1  ;;  %v698_v63 = vrot.slane %v697_v59, 1 }
 0x278   : > { %v692_v1 = vadd.f32 %v691_v62, %v690_v58  ;;  %v699_v2 = vadd.f32 %v698_v63, %v697_v59 }
 0x27a   : > { %v709_v5 = vadd.f32 %v705_v60, %v692_v1  ;;  %v710_v6 = vadd.f32 %v705_v60, %v699_v2 }
 0x27c   : > { %v716_v8 = vrot.slane %v709_v5, 6  ;;  %v717_v9 = vrot.slane %v710_v6, 5 }
 0x27e   : > { %v721_v11 = vsel %vm720_vm2, %v716_v8, %v717_v9 }
 0x27f   : > { %v723_v12 = vsel %vm722_vm3, %v719_v10, %v721_v11 }
 0x280   : > { %729 = vst.msk [vmem:[%s188_s17] sm:$0xf] %vm727_vm4, %v723_v12 }
 0x281   : > { %982 = shalt.err (!%p979_p4)
}
 0x282   : > { %872 = dma.vmem_to_hbm [thread:$0]  (%p1094_p10), %s744_s19, 64, %s746_s16, %s731_s20  }
 0x283 PF: > { %p883_p5 = scmp.ge.s32.totalorder %s1021_s15, 2  ;;  %s757_s26 = sand.u32 1, %s1009_s12  }
 0x284   : > { %s758_s7 = scalar_lea.sflag [#allocation4], %s757_s26 }
 0x285   : > { %p879_p7 = pnand %p883_p5, %p1098_p11 }
 0x287   : > { %p880_p8 = pneg %p879_p7 }
 0x289   : > { %1004 = dma.done.wait (%p880_p8), %s758_s7, 64  }
 0x28a   : > { %1006 = vsyncadd (%p880_p8), %s758_s7, 4294967232  ;;  %p16_p9 = scmp.ge.s32.totalorder %s1070_s18, 8   ;;  %s1265_s12 = smov %s1013_s13 }
 0x28b   : > { %s1266_s13 = smov %s1017_s14  ;;  %s1267_s14 = smov %s1082_s21 }
 0x28c   : > { %s1268_s15 = smov %s1070_s18  ;;  %18 = sbr.rel (!%p16_p9) target bundleno = 5 (0x5), region = 86 }
 0x291   :  { %764 = vsyncpa [#allocation3], 1 }
 0x292   :  { %766 = vsyncpa [#allocation3 + $0x1], 1 }
 0x293   :  { %767 = vsyncpa [#allocation4], 1 }
 0x294   :  { %769 = vsyncpa [#allocation4 + $0x1], 1 }

</bundles_post_ra>
